<compile_context>
chip_gen: v7x
topology: tpu7x:2x2x1
jax: 0.10.0
libtpu: 0.0.40
codegen_flags: <defaults>
</compile_context>

<pallas_src>
import jax
import jax.numpy as jnp
from jax.experimental import pallas as pl
from jax.experimental.pallas import tpu as pltpu

UPPER_THRESHOLD = 10.0
ALPHA = 2.0                               # non-trainable branch of the PyTorch module
MAX_TILE_BYTES = 2 * 1024 * 1024          # per-block bytes for the streamed passes
SINGLE_PASS_MAX_BYTES = 2 * 1024 * 1024   # fused whole-array path cutoff (conservative:
                                          # whole-block temporaries also count against VMEM)
VMEM_LIMIT_BYTES = 32 * 1024 * 1024       # safe scoped-VMEM budget on v5e/v6e/v7x
NCORES = 2                                # pass-1 megacore split (v7x); harmless elsewhere


def _round_up(a, b):
    return ((a + b - 1) // b) * b


# ----------------------------------------------------------------------------
# Shared elementwise body (f32 math, native-dtype compares)
# ----------------------------------------------------------------------------
def _ls_relu_block(x, xf, mid_max):
    neg = x <= 0
    high = x > UPPER_THRESHOLD

    # x <= 0 -> x / (|x| + 1).  approx reciprocal + one Newton-Raphson step
    # keeps the divide off the EUP critical path while staying < 1e-5 error.
    d = jnp.abs(xf) + 1.0
    r = pl.reciprocal(d, approx=True)
    r = r * (2.0 - d * r)                  # NR refinement on the VALU
    neg_val = xf * r

    # x > 10 -> log(alpha*x + 1) + |log(..) - 10| == max(2*log - 10, 10).
    # Gate the log input so masked-out lanes never see 0/negative arguments.
    log_ = jnp.log(jnp.where(high, xf, 1.0) * ALPHA + 1.0)
    high_val = jnp.maximum(2.0 * log_ - UPPER_THRESHOLD, UPPER_THRESHOLD)

    # mid region (0 < x <= 10): broadcast of the global max.
    return jnp.where(neg, neg_val, jnp.where(high, high_val, mid_max))


# ----------------------------------------------------------------------------
# Fused single-pass kernel (whole array resident in VMEM)
# ----------------------------------------------------------------------------
def _fused_kernel(x_ref, o_ref):
    x = x_ref[...]
    xf = x.astype(jnp.float32)
    mid = jnp.logical_and(x > 0, x <= UPPER_THRESHOLD)
    mid_max = jnp.max(jnp.where(mid, xf, -jnp.inf))
    o_ref[...] = _ls_relu_block(x, xf, mid_max).astype(o_ref.dtype)


# ----------------------------------------------------------------------------
# Pass 1: streaming global max of elements in (0, 10]
# ----------------------------------------------------------------------------
def _mid_max_kernel(x_ref, part_ref):
    # part_ref: (8,128) per-core running max, resident across the "arbitrary" axis.
    @pl.when(pl.program_id(1) == 0)
    def _():
        part_ref[...] = jnp.full(part_ref.shape, -jnp.inf, jnp.float32)

    x = x_ref[...]
    xf = x.astype(jnp.float32)
    mid = jnp.logical_and(x > 0, x <= UPPER_THRESHOLD)
    tile_max = jnp.max(jnp.where(mid, xf, -jnp.inf))   # hides under the tile DMA
    part_ref[...] = jnp.maximum(part_ref[...], tile_max)


# ----------------------------------------------------------------------------
# Pass 2: tiled elementwise apply, scalar max read from SMEM
# ----------------------------------------------------------------------------
def _apply_kernel(m_ref, x_ref, o_ref):
    x = x_ref[...]
    xf = x.astype(jnp.float32)
    o_ref[...] = _ls_relu_block(x, xf, m_ref[0, 0]).astype(o_ref.dtype)


# ----------------------------------------------------------------------------
# Wrapper
# ----------------------------------------------------------------------------
def ls_relu(x):
    orig_shape = x.shape
    orig_dtype = x.dtype
    total = int(x.size)
    itemsize = x.dtype.itemsize
    flat = x.reshape(-1)

    # ------------- small: single fused pass, never pads, never slices -------------
    if total * itemsize <= SINGLE_PASS_MAX_BYTES:
        if total % 1024 == 0:
            slab = flat.reshape(total // 1024, 1024)
        elif total % 128 == 0:
            slab = flat.reshape(total // 128, 128)
        else:
            slab = flat.reshape(1, total)          # block == full array: any size legal
        out = pl.pallas_call(
            _fused_kernel,
            out_shape=jax.ShapeDtypeStruct(slab.shape, orig_dtype),
            grid=(1,),
            in_specs=[pl.BlockSpec(slab.shape, lambda i: (0, 0))],
            out_specs=pl.BlockSpec(slab.shape, lambda i: (0, 0)),
            compiler_params=pltpu.CompilerParams(
                dimension_semantics=("arbitrary",),
                vmem_limit_bytes=VMEM_LIMIT_BYTES),
        )(slab)
        return out.reshape(orig_shape)

    # ------------------------- large: two streamed passes -------------------------
    sub = {1: 32, 2: 16}.get(itemsize, 8)          # packed-sublane tile per dtype
    # Lane width: widest candidate dividing total -> no padding for typical shapes.
    C = next((c for c in (1024, 512, 256, 128) if total % c == 0), 1024)
    rows = pl.cdiv(total, C)
    max_rows = max(sub, (MAX_TILE_BYTES // (C * itemsize)) // sub * sub)
    n_blocks = pl.cdiv(rows, max_rows)
    tile_r = _round_up(pl.cdiv(rows, n_blocks), sub)
    rows_pad = n_blocks * tile_r
    padded_total = rows_pad * C

    if padded_total != total:
        # Rare fallback (ragged large tensor): minimal zero pad.  Padded zeros
        # take the x<=0 branch (0 -> 0), are excluded from the (0,10] max, and
        # are sliced off below.
        flat = jnp.pad(flat, (0, padded_total - total))
    x2d = flat.reshape(rows_pad, C)

    # Pass 1: global max over (0, 10], sharded across NCORES TensorCores.
    steps = pl.cdiv(n_blocks, NCORES)
    partials = pl.pallas_call(
        _mid_max_kernel,
        out_shape=jax.ShapeDtypeStruct((NCORES * 8, 128), jnp.float32),
        grid=(NCORES, steps),
        in_specs=[pl.BlockSpec(
            (tile_r, C),
            # Clamped block index: a duplicated tile cannot change a max, so odd
            # n_blocks never forces extra padding.
            lambda c, i: (jnp.minimum(c * steps + i, n_blocks - 1), 0))],
        out_specs=pl.BlockSpec((8, 128), lambda c, i: (c, 0)),
        compiler_params=pltpu.CompilerParams(
            dimension_semantics=("parallel", "arbitrary"),
            vmem_limit_bytes=VMEM_LIMIT_BYTES),
    )(x2d)
    mid_max = jnp.max(partials).reshape(1, 1)       # tiny (16,128) fold in XLA

    # Pass 2: elementwise apply; scalar max via SMEM; fully parallel grid.
    out2d = pl.pallas_call(
        _apply_kernel,
        out_shape=jax.ShapeDtypeStruct(x2d.shape, orig_dtype),
        grid=(n_blocks,),
        in_specs=[
            pl.BlockSpec(memory_space=pltpu.MemorySpace.SMEM),   # (1,1) scalar max
            pl.BlockSpec((tile_r, C), lambda i: (i, 0)),         # x tile
        ],
        out_specs=pl.BlockSpec((tile_r, C), lambda i: (i, 0)),
        compiler_params=pltpu.CompilerParams(
            dimension_semantics=("parallel",),
            vmem_limit_bytes=VMEM_LIMIT_BYTES),
    )(mid_max, x2d)

    if padded_total != total:
        return out2d.reshape(-1)[:total].reshape(orig_shape)
    return out2d.reshape(orig_shape)                # free view: no pad was added


# ----------------------------------------------------------------------------
# Pure-JAX reference mirroring the PyTorch forward
# ----------------------------------------------------------------------------
def ls_relu_ref(x):
    xf = x.astype(jnp.float32)
    neg = xf <= 0.0
    mid = jnp.logical_and(xf > 0.0, xf <= UPPER_THRESHOLD)
    high = xf > UPPER_THRESHOLD
    neg_val = xf / (jnp.abs(xf) + 1.0)
    mid_max = jnp.max(jnp.where(mid, xf, -jnp.inf))
    log_ = jnp.log(xf * ALPHA + 1.0)
    high_val = log_ + jnp.abs(log_ - UPPER_THRESHOLD)
    return jnp.where(neg, neg_val,
                     jnp.where(high, high_val, mid_max)).astype(x.dtype)


if __name__ == "__main__":
    # 1) Small NCHW activation (fused single-pass path); scaled so all three
    #    branches (neg / mid / high) occur.
    x1 = jax.random.normal(jax.random.PRNGKey(0), (2, 4, 16, 16), jnp.float32) * 8.0
    o1 = jax.block_until_ready(ls_relu(x1))
    assert o1.shape == x1.shape and o1.dtype == x1.dtype
    assert jnp.allclose(o1, ls_relu_ref(x1), rtol=1e-5, atol=1e-5), "mismatch (fused)"

    # 2) Ragged small shape (not a multiple of 128): still no padding, no slicing.
    x2 = jax.random.normal(jax.random.PRNGKey(1), (3, 5, 7), jnp.float32) * 8.0
    o2 = jax.block_until_ready(ls_relu(x2))
    assert jnp.allclose(o2, ls_relu_ref(x2), rtol=1e-5, atol=1e-5), "mismatch (ragged)"

    # 3) Larger activation -> two-pass streamed path (4 row-blocks, 2-core split
    #    in pass 1, SMEM scalar in pass 2), exercised with zero wrapper padding.
    x3 = jax.random.normal(jax.random.PRNGKey(2), (8, 16, 128, 128), jnp.float32) * 8.0
    o3 = jax.block_until_ready(ls_relu(x3))
    assert jnp.allclose(o3, ls_relu_ref(x3), rtol=1e-5, atol=1e-5), "mismatch (two-pass)"

    print("KERNEL_OK")
</pallas_src>

<mosaic_0001>
module attributes {stable_mosaic.version = 11 : i64} {
  func.func @_fused_kernel(%arg0: i32, %arg1: memref<2x1024xf32, #tpu.memory_space<vmem>>, %arg2: memref<2x1024xf32, #tpu.memory_space<vmem>>) attributes {dimension_semantics = [#tpu.dimension_semantics<arbitrary>], iteration_bounds = array<i64: 1>, scalar_prefetch = 0 : i64, scratch_operands = 0 : i64, tpu.core_type = #tpu.core_type<tc>, window_params = [{pipeline_mode = #tpu.pipeline_mode<synchronous>, transform_indices = @transform_0, window_bounds = array<i64: 2, 1024>}, {pipeline_mode = #tpu.pipeline_mode<synchronous>, transform_indices = @transform_1, window_bounds = array<i64: 2, 1024>}]} {
    %c0 = arith.constant 0 : index
    %c0_0 = arith.constant 0 : index
    %0 = vector.load %arg1[%c0, %c0_0] : memref<2x1024xf32, #tpu.memory_space<vmem>>, vector<2x1024xf32>
    %cst = arith.constant 0.000000e+00 : f32
    %1 = vector.broadcast %cst : f32 to vector<2x1024xf32>
    %2 = arith.cmpf ogt, %0, %1 : vector<2x1024xf32>
    %cst_1 = arith.constant 1.000000e+01 : f32
    %3 = vector.broadcast %cst_1 : f32 to vector<2x1024xf32>
    %4 = arith.cmpf ole, %0, %3 : vector<2x1024xf32>
    %5 = arith.andi %2, %4 : vector<2x1024xi1>
    %cst_2 = arith.constant 0xFF800000 : f32
    %6 = vector.broadcast %cst_2 : f32 to vector<2x1024xf32>
    %7 = arith.select %5, %0, %6 : vector<2x1024xi1>, vector<2x1024xf32>
    %8 = vector.shape_cast %7 : vector<2x1024xf32> to vector<1x2x1024xf32>
    %cst_3 = arith.constant dense<0xFF800000> : vector<1xf32>
    %9 = vector.multi_reduction <maximumf>, %8, %cst_3 [1, 2] : vector<1x2x1024xf32> to vector<1xf32>
    %10 = vector.shape_cast %9 : vector<1xf32> to vector<1x1x1xf32>
    %11 = vector.extract %10[0, 0, 0] : f32 from vector<1x1x1xf32>
    %cst_4 = arith.constant 0.000000e+00 : f32
    %12 = vector.broadcast %cst_4 : f32 to vector<2x1024xf32>
    %13 = arith.cmpf ole, %0, %12 : vector<2x1024xf32>
    %cst_5 = arith.constant 1.000000e+01 : f32
    %14 = vector.broadcast %cst_5 : f32 to vector<2x1024xf32>
    %15 = arith.cmpf ogt, %0, %14 : vector<2x1024xf32>
    %16 = math.absf %0 : vector<2x1024xf32>
    %cst_6 = arith.constant 1.000000e+00 : f32
    %17 = vector.broadcast %cst_6 : f32 to vector<2x1024xf32>
    %18 = arith.addf %16, %17 : vector<2x1024xf32>
    %19 = tpu.reciprocal %18 {approx = true} : vector<2x1024xf32> -> vector<2x1024xf32>
    %20 = arith.mulf %18, %19 : vector<2x1024xf32>
    %cst_7 = arith.constant 2.000000e+00 : f32
    %21 = vector.broadcast %cst_7 : f32 to vector<2x1024xf32>
    %22 = arith.subf %21, %20 : vector<2x1024xf32>
    %23 = arith.mulf %19, %22 : vector<2x1024xf32>
    %24 = arith.mulf %0, %23 : vector<2x1024xf32>
    %cst_8 = arith.constant 1.000000e+00 : f32
    %25 = vector.broadcast %cst_8 : f32 to vector<2x1024xf32>
    %26 = arith.select %15, %0, %25 : vector<2x1024xi1>, vector<2x1024xf32>
    %cst_9 = arith.constant 2.000000e+00 : f32
    %27 = vector.broadcast %cst_9 : f32 to vector<2x1024xf32>
    %28 = arith.mulf %26, %27 : vector<2x1024xf32>
    %cst_10 = arith.constant 1.000000e+00 : f32
    %29 = vector.broadcast %cst_10 : f32 to vector<2x1024xf32>
    %30 = arith.addf %28, %29 : vector<2x1024xf32>
    %31 = math.log %30 : vector<2x1024xf32>
    %cst_11 = arith.constant 2.000000e+00 : f32
    %32 = vector.broadcast %cst_11 : f32 to vector<2x1024xf32>
    %33 = arith.mulf %32, %31 : vector<2x1024xf32>
    %cst_12 = arith.constant 1.000000e+01 : f32
    %34 = vector.broadcast %cst_12 : f32 to vector<2x1024xf32>
    %35 = arith.subf %33, %34 : vector<2x1024xf32>
    %cst_13 = arith.constant 1.000000e+01 : f32
    %36 = vector.broadcast %cst_13 : f32 to vector<2x1024xf32>
    %37 = arith.maximumf %35, %36 : vector<2x1024xf32>
    %38 = vector.broadcast %11 : f32 to vector<2x1024xf32>
    %39 = arith.select %15, %37, %38 : vector<2x1024xi1>, vector<2x1024xf32>
    %40 = arith.select %13, %24, %39 : vector<2x1024xi1>, vector<2x1024xf32>
    %c0_14 = arith.constant 0 : index
    %c0_15 = arith.constant 0 : index
    %41 = vector.load %arg2[%c0_14, %c0_15] : memref<2x1024xf32, #tpu.memory_space<vmem>>, vector<2x1024xf32>
    tpu.vector_store %arg2[%c0_14, %c0_15], %40 {strides = array<i32>} : memref<2x1024xf32, #tpu.memory_space<vmem>>, vector<2x1024xf32>,
    return
  }
  func.func @transform_0(%arg0: i32) -> (i32, i32) {
    %c0_i32 = arith.constant 0 : i32
    %c0_i32_0 = arith.constant 0 : i32
    %c0_i32_1 = arith.constant 0 : i32
    return %c0_i32, %c0_i32_0 : i32, i32
  }
  func.func @transform_1(%arg0: i32) -> (i32, i32) {
    %c0_i32 = arith.constant 0 : i32
    %c0_i32_0 = arith.constant 0 : i32
    %c0_i32_1 = arith.constant 0 : i32
    return %c0_i32, %c0_i32_0 : i32, i32
  }
}

</mosaic_0001>

<bundles_post_ra>
// kernel: tpu_custom_call.1
= control target key start
LH: loop header
LB: loop body
LE: loop exit
PB: predicated region body
PF: predicated region fallthrough
CT: control target
= control target key end

     0   :  { %6 = vsyncpa [#allocation3], 0  ;;  %s292_s0 = inlined_call_operand.hbm [shape: f32[2,1024], index: 0, kind: input, shape index: {}]   ;;  %s293_s1 = inlined_call_operand.hbm [shape: f32[2,1024], index: 1, kind: output, shape index: {}]  }
   0x1   :  { %7 = vsyncpa [#allocation4], 0  ;;  %s219_s6 = smov [#allocation2]   ;;  %s171_s10 = scalar_lea.hbm %s292_s0, 256 }
   0x2   :  { %s14_s7 = sshll.u32 %s219_s6, 4  ;;  %p172_p0 = scmp.ne.s32.totalorder %s292_s0, %s171_s10  ;;  %s15_s7 = int_to_ptr.vmem [resolvable:$true] %s14_s7 }
   0x3   :  { %p175_p1 = scmp.lt.u32.totalorder %s171_s10, %s292_s0 }
   0x5   :  { %p177_p2 = pnand %p175_p1, %p172_p0 }
   0x7   :  { %180 = shalt.err (!%p177_p2)
}
   0x8   :  { %s181_s15 = scalar_lea.vmem %s15_s7, 256  ;;  %p186_p4 = scmp.lt.s32.totalorder %s15_s7, %s15_s7 }
   0x9   :  { %p182_p3 = scmp.ne.s32.totalorder %s15_s7, %s181_s15  ;;  %p187_p5 = scmp.lt.s32.totalorder %s181_s15, %s181_s15 }
   0xb   :  { %p188_p6 = por %p187_p5, %p186_p4 }
   0xd   :  { %p189_p7 = pnand %p188_p6, %p182_p3 }
   0xf   :  { %192 = shalt.err (!%p189_p7)
}
  0x10   :  { %17 = dma.hbm_to_vmem [thread:$0]  %s292_s0, 256, %s15_s7, [#allocation3]  }
  0x11   :  { %215 = dma.done.wait [#allocation3], 256  }
  0x12   :  { %216 = vsyncadd [#allocation3], 4294967040  ;;  %v37_v0 = vlaneseq  ;;  %v220_v1 = vmov 1983009808   ;;  %v244_v5 = vld [vmem:[#allocation2] sm:$0xff]  ;;  %v246_v6 = vld [vmem:[#allocation2 + $0x8] sm:$0xff] }
  0x13   :  { %v35_v2 = vunpack.c.l.s4 %v220_v1  ;;  %vm23_vm0 = vcmp.gt.f32.partialorder %v244_v5, 0.0  ;;  %vm24_vm1 = vcmp.gt.f32.partialorder %v246_v6, 0.0  ;;  %vm25_vm2 = vcmp.le.f32.partialorder %v244_v5, 10.0  ;;  %s221_s0 = smov [#allocation5]  }
  0x14   :  { %v38_v4 = vshrl.u32 %v37_v0, 7  ;;  %vm26_vm3 = vcmp.le.f32.partialorder %v246_v6, 10.0  ;;  %vm27_vm4 = vmand %vm23_vm0, %vm25_vm2  ;;  %vm75_vm6 = vcmask 1041408   ;;  %vm102_vm7 = vcmp.gt.f32.partialorder %v244_v5, 10.0  ;;  %s147_s18 = sshll.u32 %s221_s0, 4  ;;  %s148_s18 = int_to_ptr.vmem [resolvable:$true] %s147_s18 }
  0x15   :  { %v36_v3 = vunpack.c.0.s8 %v35_v2  ;;  %vm28_vm5 = vmand %vm24_vm1, %vm26_vm3  ;;  %v29_v8 = vsel %vm27_vm4, %v244_v5, -inf  ;;  %vm103_vm8 = vcmp.gt.f32.partialorder %v246_v6, 10.0  ;;  %v118_v42 = vsel %vm102_vm7, %v244_v5, 1.0  ;;  %s193_s20 = scalar_lea.vmem %s148_s18, 256  ;;  %p198_p9 = scmp.lt.s32.totalorder %s148_s18, %s148_s18 }
  0x16   :  { %v30_v9 = vsel %vm28_vm5, %v246_v6, -inf  ;;  %v33_v10 = vcombine.high %v29_v8, %v29_v8  ;;  %v119_v43 = vsel %vm103_vm8, %v246_v6, 1.0  ;;  %v120_v44 = vmul.f32 2.0, %v118_v42  ;;  %p194_p8 = scmp.ne.s32.totalorder %s148_s18, %s193_s20  ;;  %p199_p10 = scmp.lt.s32.totalorder %s193_s20, %s193_s20 }
  0x17   :  { %v39_v7 = vsub.s32 %v36_v3, %v38_v4  ;;  %v50_v12 = vcombine.high %v30_v9, %v30_v9  ;;  %v104_v45 = vand.u32 2147483647, %v244_v5  ;;  %v121_v46 = vmul.f32 2.0, %v119_v43 }
  0x18   :  { %v105_v47 = vand.u32 2147483647, %v246_v6  ;;  %v122_v48 = vadd.f32 1.0, %v120_v44  ;;  %vm100_vm9 = vcmp.le.f32.partialorder %v244_v5, 0.0  ;;  %vm101_vm10 = vcmp.le.f32.partialorder %v246_v6, 0.0  ;;  %p200_p11 = por %p199_p10, %p198_p9 }
  0x19   :  { %v40_v11 = vrot.slane %v29_v8, %v39_v7  ;;  %v57_v13 = vrot.slane %v30_v9, %v39_v7  ;;  %v47_v14 = vrot.slane %v33_v10, %v39_v7  ;;  %v64_v17 = vrot.slane %v50_v12, %v39_v7 }
  0x1a   :  { %v106_v49 = vadd.f32 1.0, %v104_v45  ;;  %v123_v50 = vadd.f32 1.0, %v121_v46  ;;  %v107_v51 = vadd.f32 1.0, %v105_v47  ;;  %163 = vlog2.f32 %v122_v48  ;;  %p201_p12 = pnand %p200_p11, %p194_p8 }
  0x1b   :  { %v48_v15 = vcombine.high %v40_v11, %v40_v11  ;;  %v76_v16 = vsel %vm75_vm6, %v40_v11, -inf  ;;  %v65_v18 = vcombine.high %v57_v13, %v57_v13  ;;  %v80_v19 = vsel %vm75_vm6, %v57_v13, -inf }
  0x1c   :  { %v49_v20 = vcombine.high %v47_v14, %v47_v14  ;;  %v78_v22 = vsel %vm75_vm6, %v47_v14, -inf  ;;  %v81_v23 = vmax.f32 %v76_v16, %v80_v19  ;;  %v66_v24 = vcombine.high %v64_v17, %v64_v17 }
  0x1d   :  { %v77_v21 = vsel %vm75_vm6, %v48_v15, -inf  ;;  %v82_v25 = vsel %vm75_vm6, %v65_v18, -inf  ;;  %v84_v26 = vsel %vm75_vm6, %v64_v17, -inf  ;;  %165 = vrcp.f32 %v106_v49 }
  0x1e   :  { %v79_v27 = vsel %vm75_vm6, %v49_v20, -inf  ;;  %v83_v28 = vmax.f32 %v77_v21, %v82_v25  ;;  %v85_v29 = vmax.f32 %v78_v22, %v84_v26  ;;  %v86_v30 = vsel %vm75_vm6, %v66_v24, -inf }
  0x1f   :  { %v87_v31 = vmax.f32 %v79_v27, %v86_v30  ;;  %167 = vlog2.f32 %v123_v50 }
  0x20   :  { %v88_v32 = vmax.f32 %v81_v23, %v83_v28  ;;  %169 = vrcp.f32 %v107_v51 }
  0x21   :  { %v89_v33 = vmax.f32 %v85_v29, %v87_v31 }
  0x23   :  { %v90_v34 = vmax.f32 %v88_v32, %v89_v33 }
  0x24   :  { %v164_v52 = vpop.eup %163 }
  0x25   :  { %91 = vmax.xlane.f32.xlu0 %v90_v34  ;;  %v125_v56 = vmul.f32 0.6931472, %v164_v52 }
  0x27   :  { %v166_v53 = vpop.eup %165  ;;  %v128_v60 = vmul.f32 2.0, %v125_v56 }
  0x28   :  { %v110_v58 = vmul.f32 %v166_v53, %v106_v49 }
  0x29   :  { %v168_v54 = vpop.eup %167  ;;  %v156_v0 = vadd.f32 -10.0, %v128_v60 }
  0x2a   :  { %v170_v55 = vpop.eup %169  ;;  %v127_v57 = vmul.f32 0.6931472, %v168_v54  ;;  %v112_v62 = vsub.f32 2.0, %v110_v58 }
  0x2b   :  { %v111_v59 = vmul.f32 %v170_v55, %v107_v51  ;;  %v132_v4 = vmax.f32 %v156_v0, 10.0 }
  0x2c   :  { %v129_v61 = vmul.f32 2.0, %v127_v57  ;;  %v114_v2 = vmul.f32 %v166_v53, %v112_v62 }
  0x2d   :  { %v113_v63 = vsub.f32 2.0, %v111_v59 }
  0x2e   :  { %v157_v1 = vadd.f32 -10.0, %v129_v61  ;;  %v116_v8 = vmul.f32 %v114_v2, %v244_v5 }
  0x2f   :  { %v115_v3 = vmul.f32 %v170_v55, %v113_v63 }
  0x30   :  { %v133_v7 = vmax.f32 %v157_v1, 10.0 }
  0x31   :  { %v117_v9 = vmul.f32 %v115_v3, %v246_v6 }
  0xb2   :  { %v92_v35 = vpop.xlane.xlu0 %91 }
  0xb3   :  { %v93_v36 = vrot.slane %v92_v35, 4 }
  0xb5   :  { %v94_v37 = vmax.f32 %v92_v35, %v93_v36 }
  0xb7   :  { %v95_v38 = vrot.slane %v94_v37, 2 }
  0xb9   :  { %v96_v39 = vmax.f32 %v94_v37, %v95_v38 }
  0xbb   :  { %v97_v40 = vrot.slane %v96_v39, 1 }
  0xbd   :  { %v98_v41 = vmax.f32 %v96_v39, %v97_v40 }
  0xbf   :  { %158 = vpush %v98_v41 }
  0xf0   :  { %s159_s19 = spop %158 }
  0xf1   :  { %v134_v10 = vstv %s159_s19 }
  0xf2   :  { %v135_v11 = vsel %vm102_vm7, %v132_v4, %v134_v10  ;;  %v136_v12 = vsel %vm103_vm8, %v133_v7, %v134_v10 }
  0xf3   :  { %v137_v13 = vsel %vm100_vm9, %v116_v8, %v135_v11  ;;  %v138_v14 = vsel %vm101_vm10, %v117_v9, %v136_v12 }
  0xf4   :  { %139 = vst [vmem:[#allocation5] sm:$0xff] %v137_v13  ;;  %140 = vst [vmem:[#allocation5 + $0x8] sm:$0xff] %v138_v14 }
  0xf5   :  { %204 = shalt.err (!%p201_p12)
}
  0xf6   :  { %s205_s23 = scalar_lea.hbm %s293_s1, 256 }
  0xf7   :  { %p206_p13 = scmp.ne.s32.totalorder %s293_s1, %s205_s23  ;;  %p209_p0 = scmp.lt.u32.totalorder %s205_s23, %s293_s1 }
  0xf9   :  { %p211_p1 = pnand %p209_p0, %p206_p13 }
  0xfb   :  { %214 = shalt.err (!%p211_p1)
}
  0xfc   :  { %150 = dma.vmem_to_hbm [thread:$0]  %s148_s18, 256, %s293_s1, [#allocation4]  }
  0xfd   :  { %217 = dma.done.wait [#allocation4], 256  }
  0xfe   :  { %218 = vsyncadd [#allocation4], 4294967040 }
  0xff   :  { %154 = vsyncpa [#allocation3], 1 }
 0x100   :  { %155 = vsyncpa [#allocation4], 1 }

</bundles_post_ra>
